<compile_context>
chip_gen: v5e
topology: v5e:2x2
jax: 0.10.0
libtpu: 0.0.40
codegen_flags: <defaults>
</compile_context>

<pallas_src>
import math
import jax
import jax.numpy as jnp
from jax.experimental import pallas as pl
from jax.experimental.pallas import tpu as pltpu

# ---- model config (small, deterministic) ----
B = 2            # batch
T = 8            # sequence length (== block_size)
C = 32           # n_embd
N_HEAD = 4       # n_head
HD = C // N_HEAD
EPS = 1e-5
GELU_C = 0.7978845608028654        # sqrt(2/pi)

P = 128                            # padded (lane-dense) channel width
ROWS = B * T                       # total token rows
SCALE = 1.0 / math.sqrt(HD)
NEG = -1e30                        # additive mask value


def _num_row_blocks() -> int:
    """1 grid step on single-TensorCore chips; one sequence per core on v7x."""
    try:
        kind = jax.devices()[0].device_kind.lower()
    except Exception:
        return 1
    if "7" in kind:                # v7x: 2 TensorCores per chip
        return B
    return 1


def _masked_layer_norm(xp, gamma, beta, cmask):
    # xp: (rows, P) with lanes >= C equal to 0; statistics over the C real lanes only.
    mu = jnp.sum(xp, axis=-1, keepdims=True) * (1.0 / C)
    xc = jnp.where(cmask, xp - mu, 0.0)
    var = jnp.sum(xc * xc, axis=-1, keepdims=True) * (1.0 / C)
    return xc * jax.lax.rsqrt(var + EPS) * gamma + beta


def block_kernel(x_ref, wh_ref, wmlp_ref, prm_ref, o_ref):
    rpb = x_ref.shape[0]                                       # rows in this block
    xp = x_ref[...].astype(jnp.float32)                        # (rpb, P), pad lanes 0

    lane = jax.lax.broadcasted_iota(jnp.int32, (1, P), 1)
    cmask = lane < C                                           # real-channel mask

    prm = prm_ref[...]                                         # (8 + rpb, P) f32
    ln1g, ln1b = prm[0:1], prm[1:2]    # ln1b[0, C] == 1.0  ("ones lane" for q/k bias)
    ln2g, ln2b = prm[2:3], prm[3:4]    # ln2b[0, C] == 1.0  ("ones lane" for fc bias)
    b_att, bp = prm[4:5], prm[5:6]     # b_att = bo + bv @ Wo (f32)
    mask_bias = prm[8:8 + rpb, 0:rpb]  # precomputed additive causal/sequence mask

    w_heads = wh_ref[...]                                      # (H, P, P) bf16
    wfc = wmlp_ref[0:P]                                        # (P, P) bf16
    wp = wmlp_ref[P:2 * P]                                     # (P, P) bf16

    # ---- ln_1 + causal self-attention ----
    h1 = _masked_layer_norm(xp, ln1g, ln1b, cmask)             # pad lanes 0, lane C = 1
    hb = jnp.broadcast_to(h1.astype(jnp.bfloat16)[None], (N_HEAD, rpb, P))
    # One MXU pass per head: columns [0:C] = h1 @ (Wv_h Wo_h)   (output-projected v)
    #                        [C:C+HD]      = (h1 @ Wq_h + bq_h) * scale
    #                        [C+HD:C+2HD]  =  h1 @ Wk_h + bk_h
    qkv = jnp.einsum('gtc,gcn->gtn', hb, w_heads,
                     preferred_element_type=jnp.float32)       # (H, rpb, P)
    q = qkv[:, :, C:C + HD].astype(jnp.bfloat16)
    k = qkv[:, :, C + HD:C + 2 * HD].astype(jnp.bfloat16)

    s = jnp.einsum('gtd,gsd->gts', q, k,
                   preferred_element_type=jnp.float32)         # (H, rpb, rpb)
    s = s + mask_bias[None]                                    # static additive mask
    s = s - jnp.max(s, axis=-1, keepdims=True)
    e = jnp.exp(s)
    p = e * pl.reciprocal(jnp.sum(e, axis=-1, keepdims=True), approx=True)

    # p @ (full qkv slab): lanes 0:C give P_h @ (V_h Wo_h); lanes C:C+2HD are discarded.
    att = jnp.einsum('gts,gsc->gtc', p.astype(jnp.bfloat16), qkv.astype(jnp.bfloat16),
                     preferred_element_type=jnp.float32)       # (H, rpb, P)
    att = jnp.sum(att, axis=0)                                 # fold the head sum
    att = jnp.where(cmask, att, 0.0)                           # zero q/k garbage lanes
    x1 = xp + att + b_att                                      # residual 1 (pad lanes 0)

    # ---- ln_2 + MLP (tanh GELU) ----
    h2 = _masked_layer_norm(x1, ln2g, ln2b, cmask)             # lane C = 1 -> fc bias
    f = jnp.dot(h2.astype(jnp.bfloat16), wfc,
                preferred_element_type=jnp.float32)            # (rpb, P) incl. bfc
    g = 0.5 * f * (1.0 + jnp.tanh(GELU_C * (f + 0.044715 * f * f * f)))
    m2 = jnp.dot(g.astype(jnp.bfloat16), wp,
                 preferred_element_type=jnp.float32) + bp      # (rpb, P)
    o_ref[...] = (x1 + m2).astype(o_ref.dtype)                 # lane-dense store
    # TODO(synk): when stacking many Blocks, amortize launch/DMA cost by looping layers
    # inside one pallas_call (weights resident) or feeding many more token rows per call.


def block_forward(x, params):
    (ln1g, ln1b, wqkv, bqkv, wo, bo, ln2g, ln2b, wfc, bfc, wp, bp) = params

    n_blocks = _num_row_blocks()
    assert ROWS % n_blocks == 0
    rpb = ROWS // n_blocks
    assert rpb % T == 0, "each grid block must contain whole sequences"

    # --- wrapper-side operand packing (plain XLA, free relative to the kernel) ---
    # Per-head attention slab (H, P, P):
    #   cols 0:C        = Wv_h @ Wo_h        (output projection folded into v)
    #   cols C:C+HD     = Wq_h * scale       (row C = bq_h * scale via the ones lane)
    #   cols C+HD:C+2HD = Wk_h               (row C = bk_h)
    wq, wk, wv = wqkv[:, 0:C], wqkv[:, C:2 * C], wqkv[:, 2 * C:3 * C]
    bq, bk, bv = bqkv[0:C], bqkv[C:2 * C], bqkv[2 * C:3 * C]
    wh = jnp.zeros((N_HEAD, P, P), jnp.float32)
    for h in range(N_HEAD):
        sl = slice(h * HD, (h + 1) * HD)
        wh = wh.at[h, 0:C, 0:C].set(wv[:, sl] @ wo[sl, :])
        wh = wh.at[h, 0:C, C:C + HD].set(wq[:, sl] * SCALE)
        wh = wh.at[h, C, C:C + HD].set(bq[sl] * SCALE)
        wh = wh.at[h, 0:C, C + HD:C + 2 * HD].set(wk[:, sl])
        wh = wh.at[h, C, C + HD:C + 2 * HD].set(bk[sl])
    w_heads = wh.astype(jnp.bfloat16)

    # MLP weights: fc padded on the input side (row C carries bfc), proj padded
    # on the output side; stacked into one (2P, P) slab.
    wfc_p = jnp.pad(wfc, ((0, P - C), (0, 0))).at[C, :].set(bfc)
    wp_p = jnp.pad(wp, ((0, 0), (0, P - C)))
    w_mlp = jnp.concatenate([wfc_p, wp_p], axis=0).astype(jnp.bfloat16)

    # f32 LayerNorm / bias / mask slab (8 + rpb, P).
    def _row(v):
        return jnp.pad(v.astype(jnp.float32), (0, P - v.shape[0]))

    b_att = bo + bv @ wo     # v-bias through attention (softmax rows sum to 1) + c_proj bias
    head_rows = jnp.stack([
        _row(ln1g), _row(ln1b).at[C].set(1.0),
        _row(ln2g), _row(ln2b).at[C].set(1.0),
        _row(b_att), _row(bp),
        jnp.zeros((P,), jnp.float32), jnp.zeros((P,), jnp.float32)], axis=0)

    # static causal + same-sequence additive mask over the rpb flattened rows
    r = jnp.arange(rpb)
    allowed = ((r[:, None] // T) == (r[None, :] // T)) & (r[:, None] >= r[None, :])
    mask_rows = jnp.pad(jnp.where(allowed, 0.0, NEG).astype(jnp.float32),
                        ((0, 0), (0, P - rpb)))
    pslab = jnp.concatenate([head_rows, mask_rows], axis=0)    # (8 + rpb, P)

    x_p = jnp.pad(x.reshape(ROWS, C), ((0, 0), (0, P - C)))    # lane-dense activations

    out = pl.pallas_call(
        block_kernel,
        out_shape=jax.ShapeDtypeStruct((ROWS, P), x.dtype),
        grid_spec=pltpu.PrefetchScalarGridSpec(
            num_scalar_prefetch=0,
            grid=(n_blocks,),
            in_specs=[
                pl.BlockSpec((rpb, P), lambda i: (i, 0)),          # token rows
                pl.BlockSpec((N_HEAD, P, P), lambda i: (0, 0, 0)),  # attn weights
                pl.BlockSpec((2 * P, P), lambda i: (0, 0)),         # MLP weights
                pl.BlockSpec((8 + rpb, P), lambda i: (0, 0)),       # LN/bias/mask slab
            ],
            out_specs=pl.BlockSpec((rpb, P), lambda i: (i, 0)),
        ),
        compiler_params=pltpu.CompilerParams(
            dimension_semantics=("parallel",)),
    )(x_p, w_heads, w_mlp, pslab)

    return out[:, :C].reshape(B, T, C)


# ---- pure-JAX reference (f32, faithful to the PyTorch module) ----
def block_ref(x, params):
    (ln1g, ln1b, wqkv, bqkv, wo, bo, ln2g, ln2b, wfc, bfc, wp, bp) = params

    def ln(h, g, b):
        mu = jnp.mean(h, axis=-1, keepdims=True)
        var = jnp.mean((h - mu) ** 2, axis=-1, keepdims=True)
        return (h - mu) * jax.lax.rsqrt(var + EPS) * g + b

    h = ln(x, ln1g, ln1b)
    qkv = h @ wqkv + bqkv
    q, k, v = jnp.split(qkv, 3, axis=-1)

    def heads(t):
        return t.reshape(B, T, N_HEAD, HD).transpose(0, 2, 1, 3)

    q, k, v = heads(q), heads(k), heads(v)
    s = jnp.einsum('bhtd,bhsd->bhts', q, k) / math.sqrt(HD)
    mask = jnp.tril(jnp.ones((T, T), bool))
    s = jnp.where(mask, s, -jnp.inf)
    p = jax.nn.softmax(s, axis=-1)
    y = jnp.einsum('bhts,bhsd->bhtd', p, v).transpose(0, 2, 1, 3).reshape(B, T, C)
    x = x + y @ wo + bo
    h2 = ln(x, ln2g, ln2b)
    f = h2 @ wfc + bfc
    g = 0.5 * f * (1.0 + jnp.tanh(GELU_C * (f + 0.044715 * f ** 3)))
    return x + g @ wp + bp


def init_params(key):
    ks = jax.random.split(key, 4)

    def lin(k, fan_in, fan_out):
        # PyTorch Linear default init; weights stored pre-transposed (in, out)
        bound = 1.0 / math.sqrt(fan_in)
        kw, kb = jax.random.split(k)
        w = jax.random.uniform(kw, (fan_in, fan_out), jnp.float32, -bound, bound)
        b = jax.random.uniform(kb, (fan_out,), jnp.float32, -bound, bound)
        return w, b

    ln1g = jnp.ones((C,), jnp.float32); ln1b = jnp.zeros((C,), jnp.float32)
    ln2g = jnp.ones((C,), jnp.float32); ln2b = jnp.zeros((C,), jnp.float32)
    wqkv, bqkv = lin(ks[0], C, 3 * C)
    wo, bo = lin(ks[1], C, C)
    wfc, bfc = lin(ks[2], C, 4 * C)
    wp, bp = lin(ks[3], 4 * C, C)
    return (ln1g, ln1b, wqkv, bqkv, wo, bo, ln2g, ln2b, wfc, bfc, wp, bp)


if __name__ == "__main__":
    key = jax.random.PRNGKey(0)
    kx, kp = jax.random.split(key)
    x = jax.random.normal(kx, (B, T, C), jnp.float32)
    params = init_params(kp)

    out = jax.block_until_ready(jax.jit(block_forward)(x, params))
    ref = block_ref(x, params)

    assert out.shape == (B, T, C)
    err = float(jnp.max(jnp.abs(out - ref)))
    # bf16 MXU operands (incl. folded Wv@Wo / scaled q weights / qkv & fc biases) and the
    # approximate softmax reciprocal => deliberately relaxed tolerance.
    assert jnp.allclose(out, ref, atol=3e-2, rtol=3e-2), f"max abs err {err}"
    print("KERNEL_OK")
</pallas_src>

<mosaic_0001>
module attributes {stable_mosaic.version = 11 : i64} {
  func.func @block_kernel(%arg0: i32, %arg1: memref<16x128xf32, #tpu.memory_space<vmem>>, %arg2: memref<4x128x128xbf16, #tpu.memory_space<vmem>>, %arg3: memref<256x128xbf16, #tpu.memory_space<vmem>>, %arg4: memref<24x128xf32, #tpu.memory_space<vmem>>, %arg5: memref<16x128xf32, #tpu.memory_space<vmem>>) attributes {dimension_semantics = [#tpu.dimension_semantics<parallel>], iteration_bounds = array<i64: 1>, scalar_prefetch = 0 : i64, scratch_operands = 0 : i64, tpu.core_type = #tpu.core_type<tc>, window_params = [{transform_indices = @transform_0, window_bounds = array<i64: 16, 128>}, {pipeline_mode = #tpu.pipeline_mode<synchronous>, transform_indices = @transform_1, window_bounds = array<i64: 4, 128, 128>}, {pipeline_mode = #tpu.pipeline_mode<synchronous>, transform_indices = @transform_2, window_bounds = array<i64: 256, 128>}, {pipeline_mode = #tpu.pipeline_mode<synchronous>, transform_indices = @transform_3, window_bounds = array<i64: 24, 128>}, {transform_indices = @transform_4, window_bounds = array<i64: 16, 128>}]} {
    %c0 = arith.constant 0 : index
    %c0_0 = arith.constant 0 : index
    %0 = vector.load %arg1[%c0, %c0_0] : memref<16x128xf32, #tpu.memory_space<vmem>>, vector<16x128xf32>
    %1 = tpu.iota {dimensions = array<i32: 1>} : vector<1x128xi32>
    %c32_i32 = arith.constant 32 : i32
    %2 = vector.broadcast %c32_i32 : i32 to vector<1x128xi32>
    %3 = arith.cmpi slt, %1, %2 : vector<1x128xi32>
    %c0_1 = arith.constant 0 : index
    %c0_2 = arith.constant 0 : index
    %4 = vector.load %arg4[%c0_1, %c0_2] : memref<24x128xf32, #tpu.memory_space<vmem>>, vector<24x128xf32>
    %5 = vector.extract_strided_slice %4 {offsets = [0, 0], sizes = [1, 128], strides = [1, 1]} : vector<24x128xf32> to vector<1x128xf32>
    %6 = vector.extract_strided_slice %4 {offsets = [1, 0], sizes = [1, 128], strides = [1, 1]} : vector<24x128xf32> to vector<1x128xf32>
    %7 = vector.extract_strided_slice %4 {offsets = [2, 0], sizes = [1, 128], strides = [1, 1]} : vector<24x128xf32> to vector<1x128xf32>
    %8 = vector.extract_strided_slice %4 {offsets = [3, 0], sizes = [1, 128], strides = [1, 1]} : vector<24x128xf32> to vector<1x128xf32>
    %9 = vector.extract_strided_slice %4 {offsets = [4, 0], sizes = [1, 128], strides = [1, 1]} : vector<24x128xf32> to vector<1x128xf32>
    %10 = vector.extract_strided_slice %4 {offsets = [5, 0], sizes = [1, 128], strides = [1, 1]} : vector<24x128xf32> to vector<1x128xf32>
    %11 = vector.extract_strided_slice %4 {offsets = [8, 0], sizes = [16, 16], strides = [1, 1]} : vector<24x128xf32> to vector<16x16xf32>
    %c0_3 = arith.constant 0 : index
    %c0_4 = arith.constant 0 : index
    %c0_5 = arith.constant 0 : index
    %12 = vector.load %arg2[%c0_3, %c0_4, %c0_5] : memref<4x128x128xbf16, #tpu.memory_space<vmem>>, vector<4x128x128xbf16>
    %c0_6 = arith.constant 0 : index
    %c0_7 = arith.constant 0 : index
    %13 = vector.load %arg3[%c0_6, %c0_7] : memref<256x128xbf16, #tpu.memory_space<vmem>>, vector<128x128xbf16>
    %c128 = arith.constant 128 : index
    %c0_8 = arith.constant 0 : index
    %14 = vector.load %arg3[%c128, %c0_8] : memref<256x128xbf16, #tpu.memory_space<vmem>>, vector<128x128xbf16>
    %cst = arith.constant dense<0.000000e+00> : vector<16xf32>
    %15 = vector.multi_reduction <add>, %0, %cst [1] : vector<16x128xf32> to vector<16xf32>
    %16 = vector.shape_cast %15 : vector<16xf32> to vector<16x1xf32>
    %cst_9 = arith.constant 3.125000e-02 : f32
    %17 = vector.broadcast %cst_9 : f32 to vector<16x1xf32>
    %18 = arith.mulf %16, %17 : vector<16x1xf32>
    %19 = vector.broadcast %18 : vector<16x1xf32> to vector<16x128xf32>
    %20 = arith.subf %0, %19 : vector<16x128xf32>
    %cst_10 = arith.constant 0.000000e+00 : f32
    %21 = vector.shape_cast %3 : vector<1x128xi1> to vector<1x128xi1>
    %22 = vector.broadcast %21 : vector<1x128xi1> to vector<16x128xi1>
    %23 = vector.broadcast %cst_10 : f32 to vector<16x128xf32>
    %24 = arith.select %22, %20, %23 : vector<16x128xi1>, vector<16x128xf32>
    %25 = arith.mulf %24, %24 : vector<16x128xf32>
    %cst_11 = arith.constant dense<0.000000e+00> : vector<16xf32>
    %26 = vector.multi_reduction <add>, %25, %cst_11 [1] : vector<16x128xf32> to vector<16xf32>
    %27 = vector.shape_cast %26 : vector<16xf32> to vector<16x1xf32>
    %cst_12 = arith.constant 3.125000e-02 : f32
    %28 = vector.broadcast %cst_12 : f32 to vector<16x1xf32>
    %29 = arith.mulf %27, %28 : vector<16x1xf32>
    %cst_13 = arith.constant 9.99999974E-6 : f32
    %30 = vector.broadcast %cst_13 : f32 to vector<16x1xf32>
    %31 = arith.addf %29, %30 : vector<16x1xf32>
    %32 = math.rsqrt %31 : vector<16x1xf32>
    %33 = vector.broadcast %32 : vector<16x1xf32> to vector<16x128xf32>
    %34 = arith.mulf %24, %33 : vector<16x128xf32>
    %35 = vector.broadcast %5 : vector<1x128xf32> to vector<16x128xf32>
    %36 = arith.mulf %34, %35 : vector<16x128xf32>
    %37 = vector.broadcast %6 : vector<1x128xf32> to vector<16x128xf32>
    %38 = arith.addf %36, %37 : vector<16x128xf32>
    %39 = arith.truncf %38 : vector<16x128xf32> to vector<16x128xbf16>
    %40 = vector.shape_cast %39 : vector<16x128xbf16> to vector<1x16x128xbf16>
    %41 = vector.shape_cast %40 : vector<1x16x128xbf16> to vector<1x16x128xbf16>
    %42 = vector.broadcast %41 : vector<1x16x128xbf16> to vector<4x16x128xbf16>
    "tpu.trace_start"() <{level = 10 : i32, message = "gtc,gcn->gtn"}> : () -> ()
    %cst_14 = arith.constant dense<0.000000e+00> : vector<4x16x128xf32>
    %43 = tpu.matmul %42, %12, %cst_14 {dimension_numbers = #tpu.dot_dimension_numbers<[2], [1], [1], [2], [0, 0, 0, 1, 1, 2], [0], [0]>} : vector<4x16x128xbf16>, vector<4x128x128xbf16>, vector<4x16x128xf32> -> vector<4x16x128xf32>
    "tpu.trace_stop"() : () -> ()
    %44 = vector.extract_strided_slice %43 {offsets = [0, 0, 32], sizes = [4, 16, 8], strides = [1, 1, 1]} : vector<4x16x128xf32> to vector<4x16x8xf32>
    %45 = arith.truncf %44 : vector<4x16x8xf32> to vector<4x16x8xbf16>
    %46 = vector.extract_strided_slice %43 {offsets = [0, 0, 40], sizes = [4, 16, 8], strides = [1, 1, 1]} : vector<4x16x128xf32> to vector<4x16x8xf32>
    %47 = arith.truncf %46 : vector<4x16x8xf32> to vector<4x16x8xbf16>
    "tpu.trace_start"() <{level = 10 : i32, message = "gtd,gsd->gts"}> : () -> ()
    %cst_15 = arith.constant dense<0.000000e+00> : vector<4x16x16xf32>
    %48 = tpu.matmul %45, %47, %cst_15 {dimension_numbers = #tpu.dot_dimension_numbers<[2], [2], [1], [1], [0, 0, 0, 1, 1, 1], [0], [0]>} : vector<4x16x8xbf16>, vector<4x16x8xbf16>, vector<4x16x16xf32> -> vector<4x16x16xf32>
    "tpu.trace_stop"() : () -> ()
    %49 = vector.shape_cast %11 : vector<16x16xf32> to vector<1x16x16xf32>
    %50 = vector.broadcast %49 : vector<1x16x16xf32> to vector<4x16x16xf32>
    %51 = arith.addf %48, %50 : vector<4x16x16xf32>
    %cst_16 = arith.constant dense<0xFF800000> : vector<4x16xf32>
    %52 = vector.multi_reduction <maximumf>, %51, %cst_16 [2] : vector<4x16x16xf32> to vector<4x16xf32>
    %53 = vector.shape_cast %52 : vector<4x16xf32> to vector<4x16x1xf32>
    %54 = vector.broadcast %53 : vector<4x16x1xf32> to vector<4x16x16xf32>
    %55 = arith.subf %51, %54 : vector<4x16x16xf32>
    %56 = math.exp %55 : vector<4x16x16xf32>
    %cst_17 = arith.constant dense<0.000000e+00> : vector<4x16xf32>
    %57 = vector.multi_reduction <add>, %56, %cst_17 [2] : vector<4x16x16xf32> to vector<4x16xf32>
    %58 = vector.shape_cast %57 : vector<4x16xf32> to vector<4x16x1xf32>
    %59 = tpu.reciprocal %58 {approx = true} : vector<4x16x1xf32> -> vector<4x16x1xf32>
    %60 = vector.broadcast %59 : vector<4x16x1xf32> to vector<4x16x16xf32>
    %61 = arith.mulf %56, %60 : vector<4x16x16xf32>
    %62 = arith.truncf %61 : vector<4x16x16xf32> to vector<4x16x16xbf16>
    %63 = arith.truncf %43 : vector<4x16x128xf32> to vector<4x16x128xbf16>
    "tpu.trace_start"() <{level = 10 : i32, message = "gts,gsc->gtc"}> : () -> ()
    %cst_18 = arith.constant dense<0.000000e+00> : vector<4x16x128xf32>
    %64 = tpu.matmul %62, %63, %cst_18 {dimension_numbers = #tpu.dot_dimension_numbers<[2], [1], [1], [2], [0, 0, 0, 1, 1, 2], [0], [0]>} : vector<4x16x16xbf16>, vector<4x16x128xbf16>, vector<4x16x128xf32> -> vector<4x16x128xf32>
    "tpu.trace_stop"() : () -> ()
    %cst_19 = arith.constant dense<0.000000e+00> : vector<16x128xf32>
    %65 = vector.multi_reduction <add>, %64, %cst_19 [0] : vector<4x16x128xf32> to vector<16x128xf32>
    %cst_20 = arith.constant 0.000000e+00 : f32
    %66 = vector.shape_cast %3 : vector<1x128xi1> to vector<1x128xi1>
    %67 = vector.broadcast %66 : vector<1x128xi1> to vector<16x128xi1>
    %68 = vector.broadcast %cst_20 : f32 to vector<16x128xf32>
    %69 = arith.select %67, %65, %68 : vector<16x128xi1>, vector<16x128xf32>
    %70 = arith.addf %0, %69 : vector<16x128xf32>
    %71 = vector.broadcast %9 : vector<1x128xf32> to vector<16x128xf32>
    %72 = arith.addf %70, %71 : vector<16x128xf32>
    %cst_21 = arith.constant dense<0.000000e+00> : vector<16xf32>
    %73 = vector.multi_reduction <add>, %72, %cst_21 [1] : vector<16x128xf32> to vector<16xf32>
    %74 = vector.shape_cast %73 : vector<16xf32> to vector<16x1xf32>
    %cst_22 = arith.constant 3.125000e-02 : f32
    %75 = vector.broadcast %cst_22 : f32 to vector<16x1xf32>
    %76 = arith.mulf %74, %75 : vector<16x1xf32>
    %77 = vector.broadcast %76 : vector<16x1xf32> to vector<16x128xf32>
    %78 = arith.subf %72, %77 : vector<16x128xf32>
    %cst_23 = arith.constant 0.000000e+00 : f32
    %79 = vector.shape_cast %3 : vector<1x128xi1> to vector<1x128xi1>
    %80 = vector.broadcast %79 : vector<1x128xi1> to vector<16x128xi1>
    %81 = vector.broadcast %cst_23 : f32 to vector<16x128xf32>
    %82 = arith.select %80, %78, %81 : vector<16x128xi1>, vector<16x128xf32>
    %83 = arith.mulf %82, %82 : vector<16x128xf32>
    %cst_24 = arith.constant dense<0.000000e+00> : vector<16xf32>
    %84 = vector.multi_reduction <add>, %83, %cst_24 [1] : vector<16x128xf32> to vector<16xf32>
    %85 = vector.shape_cast %84 : vector<16xf32> to vector<16x1xf32>
    %cst_25 = arith.constant 3.125000e-02 : f32
    %86 = vector.broadcast %cst_25 : f32 to vector<16x1xf32>
    %87 = arith.mulf %85, %86 : vector<16x1xf32>
    %cst_26 = arith.constant 9.99999974E-6 : f32
    %88 = vector.broadcast %cst_26 : f32 to vector<16x1xf32>
    %89 = arith.addf %87, %88 : vector<16x1xf32>
    %90 = math.rsqrt %89 : vector<16x1xf32>
    %91 = vector.broadcast %90 : vector<16x1xf32> to vector<16x128xf32>
    %92 = arith.mulf %82, %91 : vector<16x128xf32>
    %93 = vector.broadcast %7 : vector<1x128xf32> to vector<16x128xf32>
    %94 = arith.mulf %92, %93 : vector<16x128xf32>
    %95 = vector.broadcast %8 : vector<1x128xf32> to vector<16x128xf32>
    %96 = arith.addf %94, %95 : vector<16x128xf32>
    %97 = arith.truncf %96 : vector<16x128xf32> to vector<16x128xbf16>
    %cst_27 = arith.constant dense<0.000000e+00> : vector<16x128xf32>
    %98 = tpu.matmul %97, %13, %cst_27 {dimension_numbers = #tpu.dot_dimension_numbers<[1], [0], [0], [1], [0, 0, 1, 1], [], []>} : vector<16x128xbf16>, vector<128x128xbf16>, vector<16x128xf32> -> vector<16x128xf32>
    %cst_28 = arith.constant 5.000000e-01 : f32
    %99 = vector.broadcast %cst_28 : f32 to vector<16x128xf32>
    %100 = arith.mulf %99, %98 : vector<16x128xf32>
    %cst_29 = arith.constant 4.471500e-02 : f32
    %101 = vector.broadcast %cst_29 : f32 to vector<16x128xf32>
    %102 = arith.mulf %101, %98 : vector<16x128xf32>
    %103 = arith.mulf %102, %98 : vector<16x128xf32>
    %104 = arith.mulf %103, %98 : vector<16x128xf32>
    %105 = arith.addf %98, %104 : vector<16x128xf32>
    %cst_30 = arith.constant 0.797884583 : f32
    %106 = vector.broadcast %cst_30 : f32 to vector<16x128xf32>
    %107 = arith.mulf %106, %105 : vector<16x128xf32>
    %108 = math.tanh %107 : vector<16x128xf32>
    %cst_31 = arith.constant 1.000000e+00 : f32
    %109 = vector.broadcast %cst_31 : f32 to vector<16x128xf32>
    %110 = arith.addf %109, %108 : vector<16x128xf32>
    %111 = arith.mulf %100, %110 : vector<16x128xf32>
    %112 = arith.truncf %111 : vector<16x128xf32> to vector<16x128xbf16>
    %cst_32 = arith.constant dense<0.000000e+00> : vector<16x128xf32>
    %113 = tpu.matmul %112, %14, %cst_32 {dimension_numbers = #tpu.dot_dimension_numbers<[1], [0], [0], [1], [0, 0, 1, 1], [], []>} : vector<16x128xbf16>, vector<128x128xbf16>, vector<16x128xf32> -> vector<16x128xf32>
    %114 = vector.broadcast %10 : vector<1x128xf32> to vector<16x128xf32>
    %115 = arith.addf %113, %114 : vector<16x128xf32>
    %116 = arith.addf %72, %115 : vector<16x128xf32>
    %c0_33 = arith.constant 0 : index
    %c0_34 = arith.constant 0 : index
    %117 = vector.load %arg5[%c0_33, %c0_34] : memref<16x128xf32, #tpu.memory_space<vmem>>, vector<16x128xf32>
    tpu.vector_store %arg5[%c0_33, %c0_34], %116 {strides = array<i32>} : memref<16x128xf32, #tpu.memory_space<vmem>>, vector<16x128xf32>,
    return
  }
  func.func @transform_0(%arg0: i32) -> (i32, i32) {
    %c0_i32 = arith.constant 0 : i32
    %c0_i32_0 = arith.constant 0 : i32
    return %arg0, %c0_i32 : i32, i32
  }
  func.func @transform_1(%arg0: i32) -> (i32, i32, i32) {
    %c0_i32 = arith.constant 0 : i32
    %c0_i32_0 = arith.constant 0 : i32
    %c0_i32_1 = arith.constant 0 : i32
    %c0_i32_2 = arith.constant 0 : i32
    return %c0_i32, %c0_i32_0, %c0_i32_1 : i32, i32, i32
  }
  func.func @transform_2(%arg0: i32) -> (i32, i32) {
    %c0_i32 = arith.constant 0 : i32
    %c0_i32_0 = arith.constant 0 : i32
    %c0_i32_1 = arith.constant 0 : i32
    return %c0_i32, %c0_i32_0 : i32, i32
  }
  func.func @transform_3(%arg0: i32) -> (i32, i32) {
    %c0_i32 = arith.constant 0 : i32
    %c0_i32_0 = arith.constant 0 : i32
    %c0_i32_1 = arith.constant 0 : i32
    return %c0_i32, %c0_i32_0 : i32, i32
  }
  func.func @transform_4(%arg0: i32) -> (i32, i32) {
    %c0_i32 = arith.constant 0 : i32
    %c0_i32_0 = arith.constant 0 : i32
    return %arg0, %c0_i32 : i32, i32
  }
}

</mosaic_0001>

<bundles_post_ra>
// kernel: block_forward.1
= control target key start
LH: loop header
LB: loop body
LE: loop exit
PB: predicated region body
PF: predicated region fallthrough
CT: control target
= control target key end

     0   :  { %v20_v2 = vlaneseq  ;;  %s1251_s30 = smov 88   ;;  %vm445_vm7 = vcmask 64512   ;;  %vm553_vm8 = vcmask 130048   ;;  %s1527_s0 = inlined_call_operand.vmem [shape: f32[16,128], index: 0, kind: input, shape index: {}]   ;;  %s1528_s1 = inlined_call_operand.vmem [shape: bf16[4,128,128], index: 1, kind: input, shape index: {}]   ;;  %s1529_s3 = inlined_call_operand.vmem [shape: f32[24,128], index: 3, kind: input, shape index: {}]   ;;  %s1530_s2 = inlined_call_operand.vmem [shape: bf16[256,128], index: 2, kind: input, shape index: {}]   ;;  %s1531_s4 = inlined_call_operand.vmem [shape: f32[16,128], index: 4, kind: output, shape index: {}]  }
   0x1   :  { %v1280_v0 = vld [vmem:[%s1527_s0] sm:$0xff]  ;;  %v1286_v1 = vld [vmem:[%s1527_s0 + $0x8] sm:$0xff]  ;;  %v1163_v14 = vld [vmem:[%s1528_s1 + $0x38] sm:$0xff] }
   0x2   :  { %122 = vadd.xlane.f32.xlu0 %v1280_v0  ;;  %v1289_v3 = vand.u32 127, %v20_v2  ;;  %v1171_v15 = vld [vmem:[%s1528_s1 + $0x78] sm:$0xff]  ;;  %228 = vmatpush.bf16.msra.mxu0 %v1163_v14  ;;  %v1162_v18 = vld [vmem:[%s1528_s1 + $0x30] sm:$0xff]  ;;  %v1161_v22 = vld [vmem:[%s1528_s1 + $0x28] sm:$0xff] }
   0x3   :  { %v1179_v16 = vld [vmem:[%s1528_s1 + $0xb8] sm:$0xff]  ;;  %290 = vmatpush.bf16.msra.mxu1 %v1171_v15  ;;  %v1170_v19 = vld [vmem:[%s1528_s1 + $0x70] sm:$0xff]  ;;  %v1169_v23 = vld [vmem:[%s1528_s1 + $0x68] sm:$0xff] }
   0x4   :  { %vm22_vm0 = vcmp.lt.s32.totalorder %v1289_v3, 32  ;;  %v1187_v17 = vld [vmem:[%s1528_s1 + $0xf8] sm:$0xff]  ;;  %352 = vmatpush.bf16.msra.mxu2 %v1179_v16  ;;  %v1178_v20 = vld [vmem:[%s1528_s1 + $0xb0] sm:$0xff]  ;;  %v1177_v24 = vld [vmem:[%s1528_s1 + $0xa8] sm:$0xff] }
   0x5   :  { %414 = vmatpush.bf16.msra.mxu3 %v1187_v17  ;;  %v1186_v21 = vld [vmem:[%s1528_s1 + $0xf0] sm:$0xff]  ;;  %v1185_v25 = vld [vmem:[%s1528_s1 + $0xe8] sm:$0xff]  ;;  %v1160_v26 = vld [vmem:[%s1528_s1 + $0x20] sm:$0xff] }
   0x6   :  { %229 = vmatpush.bf16.msra.mxu0 %v1162_v18  ;;  %v1168_v27 = vld [vmem:[%s1528_s1 + $0x60] sm:$0xff]  ;;  %v1159_v30 = vld [vmem:[%s1528_s1 + $0x18] sm:$0xff]  ;;  %v1158_v34 = vld [vmem:[%s1528_s1 + $0x10] sm:$0xff] }
   0x7   :  { %291 = vmatpush.bf16.msra.mxu1 %v1170_v19  ;;  %v1176_v28 = vld [vmem:[%s1528_s1 + $0xa0] sm:$0xff]  ;;  %v1167_v31 = vld [vmem:[%s1528_s1 + $0x58] sm:$0xff]  ;;  %v1166_v35 = vld [vmem:[%s1528_s1 + $0x50] sm:$0xff] }
   0x8   :  { %353 = vmatpush.bf16.msra.mxu2 %v1178_v20  ;;  %v1184_v29 = vld [vmem:[%s1528_s1 + $0xe0] sm:$0xff]  ;;  %v1175_v32 = vld [vmem:[%s1528_s1 + $0x98] sm:$0xff]  ;;  %v1174_v36 = vld [vmem:[%s1528_s1 + $0x90] sm:$0xff] }
   0x9   :  { %415 = vmatpush.bf16.msra.mxu3 %v1186_v21  ;;  %v1183_v33 = vld [vmem:[%s1528_s1 + $0xd8] sm:$0xff]  ;;  %v1182_v37 = vld [vmem:[%s1528_s1 + $0xd0] sm:$0xff]  ;;  %v1157_v40 = vld [vmem:[%s1528_s1 + $0x8] sm:$0xff] }
   0xa   :  { %124 = vadd.xlane.f32.xlu0 %v1286_v1  ;;  %230 = vmatpush.bf16.msra.mxu0 %v1161_v22  ;;  %v1165_v41 = vld [vmem:[%s1528_s1 + $0x48] sm:$0xff]  ;;  %v1156_v45 = vld [vmem:[%s1528_s1] sm:$0xff] }
   0xb   :  { %292 = vmatpush.bf16.msra.mxu1 %v1169_v23  ;;  %v1173_v42 = vld [vmem:[%s1528_s1 + $0x88] sm:$0xff]  ;;  %v1164_v46 = vld [vmem:[%s1528_s1 + $0x40] sm:$0xff] }
   0xc   :  { %354 = vmatpush.bf16.msra.mxu2 %v1177_v24  ;;  %v1181_v43 = vld [vmem:[%s1528_s1 + $0xc8] sm:$0xff]  ;;  %v1172_v47 = vld [vmem:[%s1528_s1 + $0x80] sm:$0xff] }
   0xd   :  { %416 = vmatpush.bf16.msra.mxu3 %v1185_v25  ;;  %v1180_v48 = vld [vmem:[%s1528_s1 + $0xc0] sm:$0xff]  ;;  %s1250_s1 = smov 96  }
   0xe   :  { %231 = vmatpush.bf16.msra.mxu0 %v1160_v26  ;;  %v1405_v58 = vld [vmem:[%s1529_s3] sm:$0xff] }
   0xf   :  { %293 = vmatpush.bf16.msra.mxu1 %v1168_v27  ;;  %v166_v63 = vperm.slane %v1405_v58, 0  ;;  %v1192_v3 = vld [vmem:[%s1530_s2 + $0x20] sm:$0xff] }
  0x10   :  { %355 = vmatpush.bf16.msra.mxu2 %v1176_v28 }
  0x11   :  { %417 = vmatpush.bf16.msra.mxu3 %v1184_v29 }
  0x12   :  { %232 = vmatpush.bf16.msra.mxu0 %v1159_v30 }
  0x13   :  { %294 = vmatpush.bf16.msra.mxu1 %v1167_v31 }
  0x14   :  { %356 = vmatpush.bf16.msra.mxu2 %v1175_v32 }
  0x15   :  { %418 = vmatpush.bf16.msra.mxu3 %v1183_v33 }
  0x16   :  { %233 = vmatpush.bf16.msra.mxu0 %v1158_v34 }
  0x17   :  { %295 = vmatpush.bf16.msra.mxu1 %v1166_v35 }
  0x18   :  { %357 = vmatpush.bf16.msra.mxu2 %v1174_v36 }
  0x19   :  { %419 = vmatpush.bf16.msra.mxu3 %v1182_v37 }
  0x1a   :  { %234 = vmatpush.bf16.msra.mxu0 %v1157_v40 }
  0x1b   :  { %296 = vmatpush.bf16.msra.mxu1 %v1165_v41 }
  0x1c   :  { %358 = vmatpush.bf16.msra.mxu2 %v1173_v42 }
  0x1d   :  { %420 = vmatpush.bf16.msra.mxu3 %v1181_v43 }
  0x1e   :  { %235 = vmatpush.bf16.msra.mxu0 %v1156_v45 }
  0x1f   :  { %297 = vmatpush.bf16.msra.mxu1 %v1164_v46 }
  0x20   :  { %359 = vmatpush.bf16.msra.mxu2 %v1172_v47 }
  0x21   :  { %421 = vmatpush.bf16.msra.mxu3 %v1180_v48 }
  0x75   :  { %v123_v4 = vpop.xlane.xlu0 %122 }
  0x76   :  { %v126_v5 = vmul.f32 0.03125, %v123_v4 }
  0x78   :  { %v128_v6 = vsub.f32 %v1280_v0, %v126_v5 }
  0x7a   :  { %v1295_v7 = vsel %vm22_vm0, %v128_v6, 0.0 }
  0x7b   :  { %v134_v8 = vmul.f32 %v1295_v7, %v1295_v7 }
  0x7d   :  { %136 = vadd.xlane.f32.xlu1 %v134_v8  ;;  %v125_v9 = vpop.xlane.xlu0 %124  ;;  %v169_v8 = vperm.slane %v1405_v58, 1 }
  0x7e   :  { %v127_v10 = vmul.f32 0.03125, %v125_v9 }
  0x80   :  { %v129_v11 = vsub.f32 %v1286_v1, %v127_v10 }
  0x82   :  { %v1302_v12 = vsel %vm22_vm0, %v129_v11, 0.0 }
  0x83   :  { %v135_v13 = vmul.f32 %v1302_v12, %v1302_v12 }
  0x85   :  { %138 = vadd.xlane.f32.xlu1 %v135_v13 }
  0xf0   :  { %v137_v38 = vpop.xlane.xlu1 %136 }
  0xf1   :  { %v140_v39 = vmul.f32 0.03125, %v137_v38 }
  0xf3   :  { %v142_v44 = vadd.f32 1e-05, %v140_v39 }
  0xf5   :  { %1206 = vrsqrt.f32 %v142_v44  ;;  %vm150_vm2 = vweird.f32 %v142_v44 }
  0xf8   :  { %v139_v49 = vpop.xlane.xlu1 %138 }
  0xf9   :  { %v141_v50 = vmul.f32 0.03125, %v139_v49 }
  0xfb   :  { %v1207_v51 = vpop.eup %1206  ;;  %v143_v52 = vadd.f32 1e-05, %v141_v50 }
  0xfc   :  { %v145_v53 = vmul.f32 %v1207_v51, %v142_v44  ;;  %vm151_vm1 = vweird.f32 %v1207_v51 }
  0xfd   :  { %1208 = vrsqrt.f32 %v143_v52  ;;  %vm152_vm3 = vmor %vm150_vm2, %vm151_vm1  ;;  %vm160_vm5 = vweird.f32 %v143_v52 }
  0xfe   :  { %v146_v54 = vmul.f32 %v1207_v51, %v145_v53 }
 0x100   :  { %v147_v55 = vmul.f32 0.5, %v146_v54 }
 0x102   :  { %v148_v56 = vsub.f32 1.5, %v147_v55 }
 0x103   :  { %v1209_v57 = vpop.eup %1208 }
 0x104   :  { %v149_v59 = vmul.f32 %v1207_v51, %v148_v56  ;;  %v155_v60 = vmul.f32 %v1209_v57, %v143_v52  ;;  %vm161_vm4 = vweird.f32 %v1209_v57 }
 0x105   :  { %vm162_vm6 = vmor %vm160_vm5, %vm161_vm4 }
 0x106   :  { %v153_v61 = vsel %vm152_vm3, %v1207_v51, %v149_v59  ;;  %v156_v62 = vmul.f32 %v1209_v57, %v155_v60  ;;  %v24_v60 = vld [vmem:[%s1529_s3 + $0x8] sm:$0xff] }
 0x107   :  { %v164_v2 = vmul.f32 %v153_v61, %v1295_v7 }
 0x108   :  { %v157_v4 = vmul.f32 0.5, %v156_v62 }
 0x109   :  { %v167_v6 = vmul.f32 %v166_v63, %v164_v2 }
 0x10a   :  { %v158_v5 = vsub.f32 1.5, %v157_v4 }
 0x10b   :  { %v170_v13 = vadd.f32 %v169_v8, %v167_v6 }
 0x10c   :  { %v159_v9 = vmul.f32 %v1209_v57, %v158_v5 }
 0x10d   :  { %v172_v16 = vpack.c.bf16 %v170_v13, %v170_v13  ;;  %v25_v13 = vld [vmem:[%s1529_s3 + $0x10] sm:$0xff] }
 0x10e   :  { %v163_v10 = vsel %vm162_vm6, %v1209_v57, %v159_v9 }
 0x10f   :  { %v165_v11 = vmul.f32 %v163_v10, %v1302_v12  ;;  %v176_v18 = vunpack.c.l.b16 %v172_v16 }
 0x111   :  { %v168_v14 = vmul.f32 %v166_v63, %v165_v11 }
 0x113   :  { %v171_v15 = vadd.f32 %v169_v8, %v168_v14 }
 0x115   :  { %v173_v17 = vpack.c.bf16 %v171_v15, %v171_v15 }
 0x117   :  { %v177_v19 = vunpack.c.l.b16 %v173_v17 }
 0x119   :  { %v178_v7 = vpack.c.b16 %v177_v19, %v176_v18 }
 0x11b   :  { %236 = vmatmul.bf16.vlgmr.msra.gmra.mxu0 %v178_v7  ;;  %298 = vmatmul.bf16.vlgmr.msra.gmra.mxu1 %v178_v7 }
 0x11c   :  { %360 = vmatmul.bf16.vlgmr.msra.gmra.mxu2 %v178_v7  ;;  %422 = vmatmul.bf16.vlgmr.msra.gmra.mxu3 %v178_v7 }
 0x198   :  { %v237_v20 = vpop.f32.mrf.mxu0  ;;  %v299_v21 = vpop.f32.mrf.mxu1 }
 0x199   :  { %v428_v22 = vpack.c.bf16 %v237_v20, %v237_v20  ;;  %v430_v23 = vpack.c.bf16 %v299_v21, %v299_v21 }
 0x19b   :  { %v438_v29 = vunpack.c.l.b16 %v428_v22  ;;  %v468_v30 = vunpack.c.l.b16 %v430_v23 }
 0x19f   :  { %v423_v24 = vpop.f32.mrf.mxu3  ;;  %v361_v12 = vpop.f32.mrf.mxu2 }
 0x1a0   :  { %v239_v25 = vpop.f32.mrf.mxu0  ;;  %v301_v26 = vpop.f32.mrf.mxu1  ;;  %v434_v36 = vpack.c.bf16 %v423_v24, %v423_v24  ;;  %v432_v43 = vpack.c.bf16 %v361_v12, %v361_v12 }
 0x1a1   :  { %v429_v27 = vpack.c.bf16 %v239_v25, %v239_v25  ;;  %v431_v28 = vpack.c.bf16 %v301_v26, %v301_v26 }
 0x1a2   :  { %v526_v40 = vunpack.c.l.b16 %v434_v36  ;;  %v497_v45 = vunpack.c.l.b16 %v432_v43 }
 0x1a3   :  { %v439_v31 = vunpack.c.l.b16 %v429_v27  ;;  %v469_v32 = vunpack.c.l.b16 %v431_v28 }
 0x1a5   :  { %v440_v33 = vpack.c.b16 %v439_v31, %v438_v29  ;;  %v470_v34 = vpack.c.b16 %v469_v32, %v468_v30 }
 0x1a7   :  { %v425_v35 = vpop.f32.mrf.mxu3  ;;  %471 = vrot.lane.b32.xlu1 %v470_v34, %s1250_s1  ;;  %689 = vmatpush.bf16.msrb.mxu1 %v470_v34  ;;  %v363_v39 = vpop.f32.mrf.mxu2 }
 0x1a8   :  { %v435_v37 = vpack.c.bf16 %v425_v35, %v425_v35  ;;  %441 = vrot.lane.b32.xlu0 %v440_v33, %s1250_s1  ;;  %443 = vrot.lane.b32.xlu2 %v440_v33, %s1251_s30  ;;  %v433_v41 = vpack.c.bf16 %v363_v39, %v363_v39 }
 0x1a9   :  { %666 = vmatpush.bf16.msrb.mxu0 %v440_v33 }
 0x1aa   :  { %v527_v38 = vunpack.c.l.b16 %v435_v37  ;;  %v498_v44 = vunpack.c.l.b16 %v433_v41 }
 0x1ac   :  { %v528_v42 = vpack.c.b16 %v527_v38, %v526_v40  ;;  %v499_v46 = vpack.c.b16 %v498_v44, %v497_v45 }
 0x1b0   :  { %529 = vrot.lane.b32.xlu0 %v528_v42, %s1250_s1  ;;  %473 = vrot.lane.b32.xlu2 %v470_v34, %s1251_s30 }
 0x1b8   :  { %502 = vrot.lane.b32.xlu2 %v499_v46, %s1251_s30 }
 0x1c0   :  { %531 = vrot.lane.b32.xlu2 %v528_v42, %s1251_s30 }
 0x1c8   :  { %500 = vrot.lane.b32.xlu2 %v499_v46, %s1250_s1 }
 0x202   :  { %v444_v47 = vpop.permute.xlu2 %443 }
 0x203   :  { %v450_v48 = vsel %vm445_vm7, %v444_v47, 0 }
 0x204   :  { %459 = vmatpush.bf16.xpose.msrb.mxu2 %v450_v48 }
 0x20a   :  { %v474_v49 = vpop.permute.xlu2 %473 }
 0x20b   :  { %v479_v50 = vsel %vm445_vm7, %v474_v49, 0 }
 0x20c   :  { %488 = vmatpush.bf16.xpose.msrb.mxu3 %v479_v50 }
 0x212   :  { %v503_v51 = vpop.permute.xlu2 %502 }
 0x213   :  { %v508_v52 = vsel %vm445_vm7, %v503_v51, 0 }
 0x214   :  { %517 = vmatpush.bf16.xpose.msra.mxu2 %v508_v52 }
 0x219   :  { %v472_v53 = vpop.permute.xlu1 %471 }
 0x21a   :  { %v442_v54 = vpop.permute.xlu0 %441  ;;  %v532_v55 = vpop.permute.xlu2 %531  ;;  %1085 = vmatmul.msk.bf16.vlgmr.msrb.gmra.mxu3 %vm445_vm7, %v472_v53 }
 0x21b   :  { %v537_v56 = vsel %vm445_vm7, %v532_v55, 0  ;;  %1084 = vmatmul.msk.bf16.vlgmr.msrb.gmra.mxu2 %vm445_vm7, %v442_v54 }
 0x21c   :  { %712 = vmatpush.bf16.msrb.mxu2 %v499_v46  ;;  %546 = vmatpush.bf16.xpose.msra.mxu3 %v537_v56 }
 0x222   :  { %v530_v57 = vpop.permute.xlu0 %529  ;;  %v501_v59 = vpop.permute.xlu2 %500 }
 0x224   :  { %735 = vmatpush.bf16.msrb.mxu3 %v528_v42 }
 0x22a   :  { %1087 = vmatmul.msk.bf16.vlgmr.msra.gmra.mxu3 %vm445_vm7, %v530_v57 }
 0x22b   :  { %1086 = vmatmul.msk.bf16.vlgmr.msra.gmra.mxu2 %vm445_vm7, %v501_v59 }
 0x29d   :  { %v490_v61 = vpop.f32.mrf.mxu3 }
 0x29e   :  { %v461_v62 = vpop.f32.mrf.mxu2  ;;  %v491_v22 = vadd.f32 %v490_v61, %v24_v60 }
 0x29f   :  { %v462_v63 = vadd.f32 %v461_v62, %v24_v60 }
 0x2a0   :  { %v560_v25 = vsel %vm553_vm8, %v491_v22, -inf }
 0x2a1   :  { %v554_v2 = vsel %vm553_vm8, %v462_v63, -inf }
 0x2a2   :  { %555 = vmax.xlane.f32.xlu1 %v554_v2 }
 0x2a5   :  { %v492_v4 = vpop.f32.mrf.mxu3 }
 0x2a6   :  { %v463_v5 = vpop.f32.mrf.mxu2  ;;  %v493_v23 = vadd.f32 %v492_v4, %v25_v13 }
 0x2a7   :  { %v464_v15 = vadd.f32 %v463_v5, %v25_v13 }
 0x2a8   :  { %v563_v24 = vsel %vm553_vm8, %v493_v23, -inf }
 0x2a9   :  { %v557_v7 = vsel %vm553_vm8, %v464_v15, -inf }
 0x2ad   :  { %v548_v6 = vpop.f32.mrf.mxu3 }
 0x2ae   :  { %v519_v8 = vpop.f32.mrf.mxu2  ;;  %v549_v9 = vadd.f32 %v548_v6, %v24_v60 }
 0x2af   :  { %v520_v10 = vadd.f32 %v519_v8, %v24_v60 }
 0x2b0   :  { %v572_v11 = vsel %vm553_vm8, %v549_v9, -inf }
 0x2b1   :  { %573 = vmax.xlane.f32.xlu0 %v572_v11  ;;  %v566_v14 = vsel %vm553_vm8, %v520_v10, -inf }
 0x2b2   :  { %567 = vmax.xlane.f32.xlu2 %v566_v14 }
 0x2b5   :  { %v550_v16 = vpop.f32.mrf.mxu3 }
 0x2b6   :  { %v521_v17 = vpop.f32.mrf.mxu2  ;;  %v551_v18 = vadd.f32 %v550_v16, %v25_v13 }
 0x2b7   :  { %v522_v19 = vadd.f32 %v521_v17, %v25_v13 }
 0x2b8   :  { %v575_v20 = vsel %vm553_vm8, %v551_v18, -inf }
 0x2b9   :  { %558 = vmax.xlane.f32.xlu0 %v557_v7  ;;  %v569_v21 = vsel %vm553_vm8, %v522_v19, -inf }
 0x2ba   :  { %570 = vmax.xlane.f32.xlu1 %v569_v21  ;;  %576 = vmax.xlane.f32.xlu2 %v575_v20 }
 0x2c2   :  { %564 = vmax.xlane.f32.xlu1 %v563_v24  ;;  %561 = vmax.xlane.f32.xlu2 %v560_v25 }
 0x315   :  { %v556_v26 = vpop.xlane.xlu1 %555 }
 0x316   :  { %v578_v12 = vsub.f32 %v462_v63, %v556_v26 }
 0x318   :  { %v586_v27 = vmul.f32 1.442695, %v578_v12 }
 0x31a   :  { %1210 = vpow2.f32 %v586_v27 }
 0x320   :  { %v1433_v28 = vpop.eup %1210 }
 0x321   :  { %v602_v29 = vsel %vm553_vm8, %v1433_v28, 0.0 }
 0x322   :  { %603 = vadd.xlane.f32.xlu2 %v602_v29 }
 0x324   :  { %v574_v30 = vpop.xlane.xlu0 %573 }
 0x325   :  { %v584_v31 = vsub.f32 %v549_v9, %v574_v30  ;;  %v568_v32 = vpop.xlane.xlu2 %567 }
 0x326   :  { %v582_v33 = vsub.f32 %v520_v10, %v568_v32 }
 0x327   :  { %v598_v34 = vmul.f32 1.442695, %v584_v31 }
 0x328   :  { %v594_v35 = vmul.f32 1.442695, %v582_v33 }
 0x329   :  { %1212 = vpow2.f32 %v598_v34 }
 0x32a   :  { %1214 = vpow2.f32 %v594_v35 }
 0x32c   :  { %v559_v36 = vpop.xlane.xlu0 %558 }
 0x32d   :  { %v579_v37 = vsub.f32 %v464_v15, %v559_v36  ;;  %v571_v38 = vpop.xlane.xlu1 %570  ;;  %v577_v39 = vpop.xlane.xlu2 %576 }
 0x32e   :  { %v583_v40 = vsub.f32 %v522_v19, %v571_v38  ;;  %v585_v41 = vsub.f32 %v551_v18, %v577_v39 }
 0x32f   :  { %v1213_v42 = vpop.eup %1212  ;;  %v588_v43 = vmul.f32 1.442695, %v579_v37 }
 0x330   :  { %v1215_v44 = vpop.eup %1214  ;;  %v596_v45 = vmul.f32 1.442695, %v583_v40  ;;  %v600_v46 = vmul.f32 1.442695, %v585_v41  ;;  %v620_v47 = vsel %vm553_vm8, %v1213_v42, 0.0 }
 0x331   :  { %1216 = vpow2.f32 %v588_v43  ;;  %621 = vadd.xlane.f32.xlu1 %v620_v47  ;;  %v614_v48 = vsel %vm553_vm8, %v1215_v44, 0.0 }
 0x332   :  { %1218 = vpow2.f32 %v596_v45  ;;  %615 = vadd.xlane.f32.xlu0 %v614_v48 }
 0x333   :  { %1220 = vpow2.f32 %v600_v46 }
 0x335   :  { %v565_v49 = vpop.xlane.xlu1 %564  ;;  %v562_v50 = vpop.xlane.xlu2 %561 }
 0x336   :  { %v581_v51 = vsub.f32 %v493_v23, %v565_v49  ;;  %v580_v52 = vsub.f32 %v491_v22, %v562_v50 }
 0x337   :  { %v1217_v53 = vpop.eup %1216 }
 0x338   :  { %v1219_v54 = vpop.eup %1218  ;;  %v592_v55 = vmul.f32 1.442695, %v581_v51  ;;  %v590_v56 = vmul.f32 1.442695, %v580_v52  ;;  %v605_v57 = vsel %vm553_vm8, %v1217_v53, 0.0 }
 0x339   :  { %v1221_v59 = vpop.eup %1220  ;;  %606 = vadd.xlane.f32.xlu1 %v605_v57  ;;  %v617_v60 = vsel %vm553_vm8, %v1219_v54, 0.0 }
 0x33a   :  { %1222 = vpow2.f32 %v592_v55  ;;  %618 = vadd.xlane.f32.xlu2 %v617_v60  ;;  %v623_v61 = vsel %vm553_vm8, %v1221_v59, 0.0 }
 0x33b   :  { %1224 = vpow2.f32 %v590_v56  ;;  %624 = vadd.xlane.f32.xlu0 %v623_v61  ;;  %v752_v56 = vperm.slane %v1405_v58, 4 }
 0x340   :  { %v1223_v62 = vpop.eup %1222 }
 0x341   :  { %v1225_v63 = vpop.eup %1224  ;;  %v611_v2 = vsel %vm553_vm8, %v1223_v62, 0.0 }
 0x342   :  { %612 = vadd.xlane.f32.xlu2 %v611_v2  ;;  %v608_v4 = vsel %vm553_vm8, %v1225_v63, 0.0 }
 0x343   :  { %609 = vadd.xlane.f32.xlu0 %v608_v4 }
 0x395   :  { %v604_v5 = vpop.xlane.xlu2 %603 }
 0x396   :  { %1226 = vrcp.f32 %v604_v5 }
 0x39c   :  { %v1227_v10 = vpop.eup %1226 }
 0x39d   :  { %v634_v16 = vmul.f32 %v1227_v10, %v1433_v28 }
 0x39f   :  { %v642_v20 = vpack.c.bf16 %v634_v16, %v634_v16 }
 0x3a1   :  { %v652_v31 = vunpack.c.l.b16 %v642_v20  ;;  %v1194_v20 = vld [vmem:[%s1530_s2 + $0x30] sm:$0xff] }
 0x3a4   :  { %v622_v6 = vpop.xlane.xlu1 %621 }
 0x3a5   :  { %v616_v8 = vpop.xlane.xlu0 %615 }
 0x3a6   :  { %1228 = vrcp.f32 %v616_v8 }
 0x3a7   :  { %1230 = vrcp.f32 %v622_v6 }
 0x3ac   :  { %v607_v9 = vpop.xlane.xlu1 %606  ;;  %v1229_v13 = vpop.eup %1228 }
 0x3ad   :  { %1232 = vrcp.f32 %v607_v9  ;;  %v619_v11 = vpop.xlane.xlu2 %618  ;;  %v1231_v15 = vpop.eup %1230  ;;  %v638_v17 = vmul.f32 %v1229_v13, %v1215_v44 }
 0x3ae   :  { %v625_v14 = vpop.xlane.xlu0 %624  ;;  %1234 = vrcp.f32 %v619_v11  ;;  %v640_v18 = vmul.f32 %v1231_v15, %v1213_v42 }
 0x3af   :  { %1236 = vrcp.f32 %v625_v14  ;;  %v646_v23 = vpack.c.bf16 %v638_v17, %v638_v17 }
 0x3b0   :  { %v648_v26 = vpack.c.bf16 %v640_v18, %v640_v18 }
 0x3b1   :  { %v698_v33 = vunpack.c.l.b16 %v646_v23  ;;  %v1190_v23 = vld [vmem:[%s1530_s2 + $0x10] sm:$0xff] }
 0x3b2   :  { %v721_v35 = vunpack.c.l.b16 %v648_v26 }
 0x3b3   :  { %v1233_v19 = vpop.eup %1232 }
 0x3b4   :  { %v1235_v7 = vpop.eup %1234  ;;  %v635_v21 = vmul.f32 %v1233_v19, %v1217_v53 }
 0x3b5   :  { %v1237_v22 = vpop.eup %1236  ;;  %v639_v24 = vmul.f32 %v1235_v7, %v1219_v54  ;;  %v613_v25 = vpop.xlane.xlu2 %612  ;;  %v1195_v7 = vld [vmem:[%s1530_s2 + $0x38] sm:$0xff] }
 0x3b6   :  { %v643_v12 = vpack.c.bf16 %v635_v21, %v635_v21  ;;  %v641_v27 = vmul.f32 %v1237_v22, %v1221_v59  ;;  %v610_v29 = vpop.xlane.xlu0 %609  ;;  %1238 = vrcp.f32 %v613_v25  ;;  %852 = vmatpush.bf16.msra.mxu0 %v1195_v7  ;;  %v1193_v21 = vld [vmem:[%s1530_s2 + $0x28] sm:$0xff]  ;;  %v1191_v22 = vld [vmem:[%s1530_s2 + $0x18] sm:$0xff] }
 0x3b7   :  { %v647_v30 = vpack.c.bf16 %v639_v24, %v639_v24  ;;  %1240 = vrcp.f32 %v610_v29  ;;  %v1189_v24 = vld [vmem:[%s1530_s2 + $0x8] sm:$0xff] }
 0x3b8   :  { %v653_v32 = vunpack.c.l.b16 %v643_v12  ;;  %v649_v28 = vpack.c.bf16 %v641_v27, %v641_v27  ;;  %v1188_v12 = vld [vmem:[%s1530_s2] sm:$0xff] }
 0x3b9   :  { %v699_v34 = vunpack.c.l.b16 %v647_v30 }
 0x3ba   :  { %v722_v36 = vunpack.c.l.b16 %v649_v28  ;;  %v654_v37 = vpack.c.b16 %v653_v32, %v652_v31  ;;  %853 = vmatpush.bf16.msra.mxu0 %v1194_v20 }
 0x3bb   :  { %v700_v38 = vpack.c.b16 %v699_v34, %v698_v33 }
 0x3bc   :  { %v1239_v39 = vpop.eup %1238  ;;  %v723_v40 = vpack.c.b16 %v722_v36, %v721_v35  ;;  %1088 = vmatmul.msk.bf16.vlgmr.msrb.gmra.mxu0 %vm553_vm8, %v654_v37 }
 0x3bd   :  { %v1241_v41 = vpop.eup %1240  ;;  %v637_v42 = vmul.f32 %v1239_v39, %v1223_v62  ;;  %1090 = vmatmul.msk.bf16.vlgmr.msrb.gmra.mxu2 %vm553_vm8, %v700_v38 }
 0x3be   :  { %v636_v43 = vmul.f32 %v1241_v41, %v1225_v63  ;;  %1091 = vmatmul.msk.bf16.vlgmr.msrb.gmra.mxu3 %vm553_vm8, %v723_v40  ;;  %854 = vmatpush.bf16.msra.mxu0 %v1193_v21 }
 0x3bf   :  { %v645_v44 = vpack.c.bf16 %v637_v42, %v637_v42 }
 0x3c0   :  { %v644_v45 = vpack.c.bf16 %v636_v43, %v636_v43  ;;  %v797_v43 = vperm.slane %v1405_v58, 2 }
 0x3c1   :  { %v676_v46 = vunpack.c.l.b16 %v645_v44 }
 0x3c2   :  { %v675_v47 = vunpack.c.l.b16 %v644_v45  ;;  %855 = vmatpush.bf16.msra.mxu0 %v1192_v3 }
 0x3c4   :  { %v677_v48 = vpack.c.b16 %v676_v46, %v675_v47 }
 0x3c6   :  { %1089 = vmatmul.msk.bf16.vlgmr.msrb.gmra.mxu1 %vm553_vm8, %v677_v48  ;;  %856 = vmatpush.bf16.msra.mxu0 %v1191_v22 }
 0x3ca   :  { %857 = vmatpush.bf16.msra.mxu0 %v1190_v23  ;;  %v885_v23 = vperm.slane %v1405_v58, 5 }
 0x3ce   :  { %858 = vmatpush.bf16.msra.mxu0 %v1189_v24 }
 0x3d2   :  { %859 = vmatpush.bf16.msra.mxu0 %v1188_v12 }
 0x439   :  { %v668_v49 = vpop.f32.mrf.mxu0 }
 0x440   :  { %v714_v50 = vpop.f32.mrf.mxu2 }
 0x441   :  { %v737_v53 = vpop.f32.mrf.mxu3  ;;  %v670_v59 = vpop.f32.mrf.mxu0 }
 0x443   :  { %v691_v51 = vpop.f32.mrf.mxu1 }
 0x444   :  { %v742_v52 = vadd.f32 %v691_v51, %v668_v49  ;;  %v800_v49 = vperm.slane %v1405_v58, 3 }
 0x446   :  { %v743_v54 = vadd.f32 %v742_v52, %v714_v50 }
 0x448   :  { %v744_v55 = vadd.f32 %v743_v54, %v737_v53  ;;  %v716_v63 = vpop.f32.mrf.mxu2  ;;  %v1203_v54 = vld [vmem:[%s1530_s2 + $0x78] sm:$0xff] }
 0x449   :  { %v739_v5 = vpop.f32.mrf.mxu3  ;;  %934 = vmatpush.bf16.msra.mxu1 %v1203_v54 }
 0x44a   :  { %v748_v57 = vsel %vm22_vm0, %v744_v55, 0.0  ;;  %v1202_v55 = vld [vmem:[%s1530_s2 + $0x70] sm:$0xff] }
 0x44b   :  { %v693_v60 = vpop.f32.mrf.mxu1  ;;  %v750_v61 = vadd.f32 %v748_v57, %v1280_v0  ;;  %v1200_v57 = vld [vmem:[%s1530_s2 + $0x60] sm:$0xff] }
 0x44c   :  { %v745_v62 = vadd.f32 %v693_v60, %v670_v59  ;;  %v1199_v59 = vld [vmem:[%s1530_s2 + $0x58] sm:$0xff]  ;;  %v1198_v60 = vld [vmem:[%s1530_s2 + $0x50] sm:$0xff] }
 0x44d   :  { %v1453_v2 = vadd.f32 %v752_v56, %v750_v61  ;;  %935 = vmatpush.bf16.msra.mxu1 %v1202_v55  ;;  %v1197_v61 = vld [vmem:[%s1530_s2 + $0x48] sm:$0xff] }
 0x44e   :  { %v746_v4 = vadd.f32 %v745_v62, %v716_v63  ;;  %v1196_v62 = vld [vmem:[%s1530_s2 + $0x40] sm:$0xff] }
 0x44f   :  { %755 = vadd.xlane.f32.xlu1 %v1453_v2 }
 0x450   :  { %v747_v6 = vadd.f32 %v746_v4, %v739_v5 }
 0x452   :  { %v749_v8 = vsel %vm22_vm0, %v747_v6, 0.0 }
 0x453   :  { %v751_v9 = vadd.f32 %v749_v8, %v1286_v1 }
 0x455   :  { %v1459_v10 = vadd.f32 %v752_v56, %v751_v9  ;;  %v1201_v56 = vld [vmem:[%s1530_s2 + $0x68] sm:$0xff] }
 0x456   :  { %936 = vmatpush.bf16.msra.mxu1 %v1201_v56 }
 0x457   :  { %757 = vadd.xlane.f32.xlu0 %v1459_v10 }
 0x45a   :  { %937 = vmatpush.bf16.msra.mxu1 %v1200_v57 }
 0x45e   :  { %938 = vmatpush.bf16.msra.mxu1 %v1199_v59 }
 0x462   :  { %939 = vmatpush.bf16.msra.mxu1 %v1198_v60 }
 0x466   :  { %940 = vmatpush.bf16.msra.mxu1 %v1197_v61 }
 0x46a   :  { %941 = vmatpush.bf16.msra.mxu1 %v1196_v62 }
 0x4c2   :  { %v756_v11 = vpop.xlane.xlu1 %755 }
 0x4c3   :  { %v759_v0 = vmul.f32 0.03125, %v756_v11 }
 0x4c5   :  { %v761_v13 = vsub.f32 %v1453_v2, %v759_v0 }
 0x4c7   :  { %v763_v14 = vsel %vm22_vm0, %v761_v13, 0.0 }
 0x4c8   :  { %v765_v15 = vmul.f32 %v763_v14, %v763_v14 }
 0x4ca   :  { %767 = vadd.xlane.f32.xlu2 %v765_v15  ;;  %v758_v16 = vpop.xlane.xlu0 %757 }
 0x4cb   :  { %v760_v17 = vmul.f32 0.03125, %v758_v16 }
 0x4cd   :  { %v762_v18 = vsub.f32 %v1459_v10, %v760_v17 }
 0x4cf   :  { %v764_v1 = vsel %vm22_vm0, %v762_v18, 0.0 }
 0x4d0   :  { %v766_v19 = vmul.f32 %v764_v1, %v764_v1 }
 0x4d2   :  { %769 = vadd.xlane.f32.xlu1 %v766_v19 }
 0x53d   :  { %v768_v25 = vpop.xlane.xlu2 %767 }
 0x53e   :  { %v771_v26 = vmul.f32 0.03125, %v768_v25 }
 0x540   :  { %v773_v27 = vadd.f32 1e-05, %v771_v26 }
 0x542   :  { %1242 = vrsqrt.f32 %v773_v27  ;;  %vm781_vm10 = vweird.f32 %v773_v27 }
 0x545   :  { %v770_v29 = vpop.xlane.xlu1 %769 }
 0x546   :  { %v772_v30 = vmul.f32 0.03125, %v770_v29 }
 0x548   :  { %v1243_v31 = vpop.eup %1242  ;;  %v774_v32 = vadd.f32 1e-05, %v772_v30 }
 0x549   :  { %v776_v28 = vmul.f32 %v1243_v31, %v773_v27  ;;  %vm782_vm9 = vweird.f32 %v1243_v31 }
 0x54a   :  { %1244 = vrsqrt.f32 %v774_v32  ;;  %vm783_vm11 = vmor %vm781_vm10, %vm782_vm9  ;;  %vm791_vm13 = vweird.f32 %v774_v32 }
 0x54b   :  { %v777_v33 = vmul.f32 %v1243_v31, %v776_v28 }
 0x54d   :  { %v778_v34 = vmul.f32 0.5, %v777_v33 }
 0x54f   :  { %v779_v35 = vsub.f32 1.5, %v778_v34 }
 0x550   :  { %v1245_v36 = vpop.eup %1244 }
 0x551   :  { %v780_v37 = vmul.f32 %v1243_v31, %v779_v35  ;;  %v786_v38 = vmul.f32 %v1245_v36, %v774_v32  ;;  %vm792_vm12 = vweird.f32 %v1245_v36 }
 0x552   :  { %vm793_vm14 = vmor %vm791_vm13, %vm792_vm12 }
 0x553   :  { %v787_v39 = vmul.f32 %v1245_v36, %v786_v38  ;;  %v784_v40 = vsel %vm783_vm11, %v1243_v31, %v780_v37 }
 0x554   :  { %v795_v44 = vmul.f32 %v784_v40, %v763_v14 }
 0x555   :  { %v788_v41 = vmul.f32 0.5, %v787_v39 }
 0x556   :  { %v798_v47 = vmul.f32 %v797_v43, %v795_v44 }
 0x557   :  { %v789_v42 = vsub.f32 1.5, %v788_v41 }
 0x558   :  { %v801_v51 = vadd.f32 %v800_v49, %v798_v47 }
 0x559   :  { %v790_v45 = vmul.f32 %v1245_v36, %v789_v42 }
 0x55b   :  { %v794_v46 = vsel %vm793_vm14, %v1245_v36, %v790_v45 }
 0x55c   :  { %v796_v48 = vmul.f32 %v794_v46, %v764_v1 }
 0x55e   :  { %v799_v50 = vmul.f32 %v797_v43, %v796_v48 }
 0x560   :  { %v802_v52 = vadd.f32 %v800_v49, %v799_v50 }
 0x562   :  { %v803_v53 = vpack.c.bf16 %v802_v52, %v801_v51 }
 0x564   :  { %860 = vmatmul.bf16.vlgmr.msra.gmra.mxu0 %v803_v53 }
 0x5e1   :  { %v861_v63 = vpop.f32.mrf.mxu0 }
 0x5e2   :  { %v868_v4 = vmul.f32 0.044715, %v861_v63  ;;  %v866_v19 = vmul.f32 0.5, %v861_v63 }
 0x5e4   :  { %v870_v5 = vmul.f32 %v868_v4, %v861_v63 }
 0x5e6   :  { %v872_v6 = vmul.f32 %v870_v5, %v861_v63 }
 0x5e8   :  { %v874_v8 = vadd.f32 %v872_v6, %v861_v63 }
 0x5e9   :  { %v863_v9 = vpop.f32.mrf.mxu0 }
 0x5ea   :  { %v869_v11 = vmul.f32 0.044715, %v863_v9  ;;  %v876_v0 = vmul.f32 0.7978846, %v874_v8  ;;  %v867_v7 = vmul.f32 0.5, %v863_v9 }
 0x5ec   :  { %v871_v13 = vmul.f32 %v869_v11, %v863_v9  ;;  %1246 = vtanh.f32 %v876_v0 }
 0x5ee   :  { %v873_v14 = vmul.f32 %v871_v13, %v863_v9 }
 0x5f0   :  { %v875_v15 = vadd.f32 %v873_v14, %v863_v9 }
 0x5f2   :  { %v877_v16 = vmul.f32 0.7978846, %v875_v15  ;;  %v1247_v17 = vpop.eup %1246 }
 0x5f3   :  { %v880_v18 = vadd.f32 1.0, %v1247_v17 }
 0x5f4   :  { %1248 = vtanh.f32 %v877_v16 }
 0x5f5   :  { %v882_v3 = vmul.f32 %v880_v18, %v866_v19 }
 0x5fa   :  { %v1249_v1 = vpop.eup %1248 }
 0x5fb   :  { %v881_v20 = vadd.f32 1.0, %v1249_v1 }
 0x5fd   :  { %v883_v21 = vmul.f32 %v881_v20, %v867_v7 }
 0x5ff   :  { %v884_v22 = vpack.c.bf16 %v883_v21, %v882_v3 }
 0x601   :  { %942 = vmatmul.bf16.vlgmr.msra.gmra.mxu1 %v884_v22 }
 0x67e   :  { %v943_v24 = vpop.f32.mrf.mxu1 }
 0x67f   :  { %v944_v25 = vadd.f32 %v943_v24, %v885_v23 }
 0x681   :  { %v948_v26 = vadd.f32 %v944_v25, %v1453_v2 }
 0x683   :  { %950 = vst [vmem:[%s1531_s4] sm:$0xff] %v948_v26 }
 0x686   :  { %v945_v12 = vpop.f32.mrf.mxu1 }
 0x687   :  { %v946_v27 = vadd.f32 %v945_v12, %v885_v23 }
 0x689   :  { %v949_v29 = vadd.f32 %v946_v27, %v1459_v10 }
 0x68b   :  { %951 = vst [vmem:[%s1531_s4 + $0x8] sm:$0xff] %v949_v29 }

</bundles_post_ra>
